<compile_context>
chip_gen: v5e
topology: v5e:2x2
jax: 0.10.0
libtpu: 0.0.40
codegen_flags: <defaults>
</compile_context>

<pallas_src>
import functools

import jax
import jax.numpy as jnp
from jax import lax
from jax.experimental import pallas as pl
from jax.experimental.pallas import tpu as pltpu

IGNORE_INDEX = -100


def _ce_kernel(logits_ref, target_ref, sum_ref, cnt_ref, *,
               ignore_index, hw, t_tile):
    k = pl.program_id(1)

    # Output blocks are revisited across the k (reduction) axis -> init at k==0.
    @pl.when(k == 0)
    def _():
        sum_ref[...] = jnp.zeros_like(sum_ref)
        cnt_ref[...] = jnp.zeros_like(cnt_ref)

    x = logits_ref[0].astype(jnp.float32)            # (C, T) compute in f32
    t = target_ref[0]                                # (1, T) int32

    # Numerically stable log-sum-exp over the class (sublane) axis.
    m = jnp.max(x, axis=0, keepdims=True)            # (1, T)
    lse = m + jnp.log(jnp.sum(jnp.exp(x - m), axis=0, keepdims=True))  # (1, T)

    # Gather target-class logit with a one-hot compare against a class iota.
    cls_idx = lax.broadcasted_iota(jnp.int32, x.shape, 0)              # (C, T)
    tgt_logit = jnp.sum(jnp.where(cls_idx == t, x, 0.0),
                        axis=0, keepdims=True)                         # (1, T)

    # Mask: ignore_index pixels and out-of-bounds lanes of a partial tail tile.
    lane = lax.broadcasted_iota(jnp.int32, t.shape, 1)                 # (1, T)
    in_bounds = (k * t_tile + lane) < hw
    valid = in_bounds & (t != ignore_index)

    loss = jnp.where(valid, lse - tgt_logit, 0.0)                      # (1, T)
    cnt = valid.astype(jnp.float32)                                    # (1, T)

    # Lane-dense vector accumulation (VPU add per step; final reduce in JAX).
    sum_ref[...] += loss.reshape(sum_ref.shape)
    cnt_ref[...] += cnt.reshape(cnt_ref.shape)


def cross_entropy_loss(inputs, target, *, reduction="mean",
                       ignore_index=IGNORE_INDEX, max_lane_tile=8192,
                       vmem_limit_bytes=32 * 1024 * 1024):
    """inputs: [B, C, H, W] float logits; target: [B, H, W] int labels."""
    B, C, H, W = inputs.shape
    HW = H * W

    # Free, contiguous reshapes only -- no transpose, no pad, no extra HBM copy.
    x = inputs.reshape(B, C, HW)                       # (B, C, HW), native dtype
    t = target.reshape(B, 1, HW).astype(jnp.int32)     # (B, 1, HW)

    # Pick the largest lane tile that keeps double-buffered logits tiles
    # around <= 12 MiB (safe on v5e's 16 MiB scoped default and v7x's VMEM).
    itemsize = jnp.dtype(inputs.dtype).itemsize
    t_budget = (6 * 1024 * 1024) // max(C * itemsize, 1)
    t_tile = min(max_lane_tile, max(128, t_budget))
    t_tile = max(128, (t_tile // 128) * 128)
    if HW <= t_tile:
        t_tile = HW            # full-dim block (allowed even if not %128)
        n_k = 1
    else:
        n_k = (HW + t_tile - 1) // t_tile   # partial tail tile masked in-kernel

    kernel = functools.partial(_ce_kernel, ignore_index=ignore_index,
                               hw=HW, t_tile=t_tile)

    sum_out, cnt_out = pl.pallas_call(
        kernel,
        out_shape=(
            jax.ShapeDtypeStruct((B, 1, t_tile), jnp.float32),
            jax.ShapeDtypeStruct((B, 1, t_tile), jnp.float32),
        ),
        grid_spec=pltpu.PrefetchScalarGridSpec(
            num_scalar_prefetch=0,
            grid=(B, n_k),
            in_specs=[
                pl.BlockSpec((1, C, t_tile), lambda b, k: (b, 0, k)),
                pl.BlockSpec((1, 1, t_tile), lambda b, k: (b, 0, k)),
            ],
            out_specs=[
                pl.BlockSpec((1, 1, t_tile), lambda b, k: (b, 0, 0)),
                pl.BlockSpec((1, 1, t_tile), lambda b, k: (b, 0, 0)),
            ],
        ),
        compiler_params=pltpu.CompilerParams(
            dimension_semantics=("parallel", "arbitrary"),
            vmem_limit_bytes=vmem_limit_bytes),
    )(x, t)

    # Tiny final tree-reduction of the per-batch, per-lane partials.
    total = jnp.sum(sum_out)
    count = jnp.sum(cnt_out)

    if reduction == "mean":
        # weight=None => mean over non-ignored elements (PyTorch semantics).
        return total / count
    elif reduction == "sum":
        return total
    else:
        raise NotImplementedError(f"reduction={reduction!r}")
    # TODO(synk): per-class `weight` tensor and reduction='none' not implemented
    # (module defaults use weight=None, reduction='mean').
    # TODO(synk): when B == 1 there is no 'parallel' grid axis for v7x's 2 TCs;
    # a (chunks, steps) split of HW would recover that if it ever matters.


if __name__ == "__main__":
    key = jax.random.PRNGKey(0)
    k1, k2, k3 = jax.random.split(key, 3)

    B, C, H, W = 2, 4, 16, 16
    logits = jax.random.normal(k1, (B, C, H, W), dtype=jnp.float32)
    target = jax.random.randint(k2, (B, H, W), 0, C, dtype=jnp.int32)
    # Sprinkle some ignore_index pixels to exercise masking.
    ignore_mask = jax.random.bernoulli(k3, 0.1, (B, H, W))
    target = jnp.where(ignore_mask, IGNORE_INDEX, target)

    loss = cross_entropy_loss(logits, target)
    jax.block_until_ready(loss)

    # Sanity check vs pure-JAX reference.
    xr = jnp.transpose(logits, (0, 2, 3, 1)).reshape(-1, C)
    tr = target.reshape(-1)
    lse = jax.scipy.special.logsumexp(xr, axis=-1)
    valid = tr != IGNORE_INDEX
    t_safe = jnp.where(valid, tr, 0)
    tgt_logit = jnp.take_along_axis(xr, t_safe[:, None], axis=-1)[:, 0]
    ref = jnp.sum(jnp.where(valid, lse - tgt_logit, 0.0)) / jnp.sum(valid)

    assert jnp.allclose(loss, ref, rtol=1e-5, atol=1e-5), (loss, ref)
    print("KERNEL_OK")
</pallas_src>

<mosaic_0001>
module attributes {stable_mosaic.version = 11 : i64} {
  func.func @_ce_kernel(%arg0: i32, %arg1: i32, %arg2: memref<1x4x256xf32, #tpu.memory_space<vmem>>, %arg3: memref<1x1x256xi32, #tpu.memory_space<vmem>>, %arg4: memref<1x1x256xf32, #tpu.memory_space<vmem>>, %arg5: memref<1x1x256xf32, #tpu.memory_space<vmem>>) attributes {dimension_semantics = [#tpu.dimension_semantics<parallel>, #tpu.dimension_semantics<arbitrary>], iteration_bounds = array<i64: 2, 1>, scalar_prefetch = 0 : i64, scratch_operands = 0 : i64, tpu.core_type = #tpu.core_type<tc>, window_params = [{transform_indices = @transform_0, window_bounds = array<i64: 1, 4, 256>}, {transform_indices = @transform_1, window_bounds = array<i64: 1, 1, 256>}, {transform_indices = @transform_2, window_bounds = array<i64: 1, 1, 256>}, {transform_indices = @transform_3, window_bounds = array<i64: 1, 1, 256>}]} {
    %c0_i32 = arith.constant 0 : i32
    %0 = arith.cmpi eq, %arg1, %c0_i32 : i32
    %1 = arith.extui %0 : i1 to i32
    %c0_i32_0 = arith.constant 0 : i32
    %2 = arith.cmpi ne, %1, %c0_i32_0 : i32
    scf.if %2 {
      %cst_23 = arith.constant 0.000000e+00 : f32
      %45 = vector.broadcast %cst_23 : f32 to vector<1x1x256xf32>
      %c0_24 = arith.constant 0 : index
      %c0_25 = arith.constant 0 : index
      %c0_26 = arith.constant 0 : index
      %46 = vector.load %arg4[%c0_24, %c0_25, %c0_26] : memref<1x1x256xf32, #tpu.memory_space<vmem>>, vector<1x1x256xf32>
      tpu.vector_store %arg4[%c0_24, %c0_25, %c0_26], %45 {strides = array<i32>} : memref<1x1x256xf32, #tpu.memory_space<vmem>>, vector<1x1x256xf32>,
      %cst_27 = arith.constant 0.000000e+00 : f32
      %47 = vector.broadcast %cst_27 : f32 to vector<1x1x256xf32>
      %c0_28 = arith.constant 0 : index
      %c0_29 = arith.constant 0 : index
      %c0_30 = arith.constant 0 : index
      %48 = vector.load %arg5[%c0_28, %c0_29, %c0_30] : memref<1x1x256xf32, #tpu.memory_space<vmem>>, vector<1x1x256xf32>
      tpu.vector_store %arg5[%c0_28, %c0_29, %c0_30], %47 {strides = array<i32>} : memref<1x1x256xf32, #tpu.memory_space<vmem>>, vector<1x1x256xf32>,
    } else {
    }
    %c0 = arith.constant 0 : index
    %c0_1 = arith.constant 0 : index
    %c0_2 = arith.constant 0 : index
    %3 = vector.load %arg2[%c0, %c0_1, %c0_2] : memref<1x4x256xf32, #tpu.memory_space<vmem>>, vector<1x4x256xf32>
    %4 = vector.shape_cast %3 : vector<1x4x256xf32> to vector<4x256xf32>
    %c0_3 = arith.constant 0 : index
    %c0_4 = arith.constant 0 : index
    %c0_5 = arith.constant 0 : index
    %5 = vector.load %arg3[%c0_3, %c0_4, %c0_5] : memref<1x1x256xi32, #tpu.memory_space<vmem>>, vector<1x1x256xi32>
    %6 = vector.shape_cast %5 : vector<1x1x256xi32> to vector<1x256xi32>
    %cst = arith.constant dense<0xFF800000> : vector<256xf32>
    %7 = vector.multi_reduction <maximumf>, %4, %cst [0] : vector<4x256xf32> to vector<256xf32>
    %8 = vector.shape_cast %7 : vector<256xf32> to vector<1x256xf32>
    %9 = vector.broadcast %8 : vector<1x256xf32> to vector<4x256xf32>
    %10 = arith.subf %4, %9 : vector<4x256xf32>
    %11 = math.exp %10 : vector<4x256xf32>
    %cst_6 = arith.constant dense<0.000000e+00> : vector<256xf32>
    %12 = vector.multi_reduction <add>, %11, %cst_6 [0] : vector<4x256xf32> to vector<256xf32>
    %13 = vector.shape_cast %12 : vector<256xf32> to vector<1x256xf32>
    %14 = math.log %13 : vector<1x256xf32>
    %15 = arith.addf %8, %14 : vector<1x256xf32>
    %16 = tpu.iota {dimensions = array<i32: 0>} : vector<4x256xi32>
    %17 = vector.broadcast %6 : vector<1x256xi32> to vector<4x256xi32>
    %18 = arith.cmpi eq, %16, %17 : vector<4x256xi32>
    %cst_7 = arith.constant 0.000000e+00 : f32
    %19 = vector.broadcast %cst_7 : f32 to vector<4x256xf32>
    %20 = arith.select %18, %4, %19 : vector<4x256xi1>, vector<4x256xf32>
    %cst_8 = arith.constant dense<0.000000e+00> : vector<256xf32>
    %21 = vector.multi_reduction <add>, %20, %cst_8 [0] : vector<4x256xf32> to vector<256xf32>
    %22 = vector.shape_cast %21 : vector<256xf32> to vector<1x256xf32>
    %23 = tpu.iota {dimensions = array<i32: 1>} : vector<1x256xi32>
    %c256_i32 = arith.constant 256 : i32
    %24 = arith.muli %arg1, %c256_i32 : i32
    %25 = vector.broadcast %24 : i32 to vector<1x256xi32>
    %26 = arith.addi %25, %23 : vector<1x256xi32>
    %c256_i32_9 = arith.constant 256 : i32
    %27 = vector.broadcast %c256_i32_9 : i32 to vector<1x256xi32>
    %28 = arith.cmpi slt, %26, %27 : vector<1x256xi32>
    %c-100_i32 = arith.constant -100 : i32
    %29 = vector.broadcast %c-100_i32 : i32 to vector<1x256xi32>
    %30 = arith.cmpi ne, %6, %29 : vector<1x256xi32>
    %31 = arith.andi %28, %30 : vector<1x256xi1>
    %32 = arith.subf %15, %22 : vector<1x256xf32>
    %cst_10 = arith.constant 0.000000e+00 : f32
    %33 = vector.broadcast %cst_10 : f32 to vector<1x256xf32>
    %34 = arith.select %31, %32, %33 : vector<1x256xi1>, vector<1x256xf32>
    %35 = arith.extui %31 : vector<1x256xi1> to vector<1x256xi32>
    %36 = arith.sitofp %35 : vector<1x256xi32> to vector<1x256xf32>
    %c0_11 = arith.constant 0 : index
    %c0_12 = arith.constant 0 : index
    %c0_13 = arith.constant 0 : index
    %37 = vector.load %arg4[%c0_11, %c0_12, %c0_13] : memref<1x1x256xf32, #tpu.memory_space<vmem>>, vector<1x1x256xf32>
    %38 = vector.shape_cast %34 : vector<1x256xf32> to vector<1x1x256xf32>
    %39 = arith.addf %37, %38 : vector<1x1x256xf32>
    %c0_14 = arith.constant 0 : index
    %c0_15 = arith.constant 0 : index
    %c0_16 = arith.constant 0 : index
    %40 = vector.load %arg4[%c0_14, %c0_15, %c0_16] : memref<1x1x256xf32, #tpu.memory_space<vmem>>, vector<1x1x256xf32>
    tpu.vector_store %arg4[%c0_14, %c0_15, %c0_16], %39 {strides = array<i32>} : memref<1x1x256xf32, #tpu.memory_space<vmem>>, vector<1x1x256xf32>,
    %c0_17 = arith.constant 0 : index
    %c0_18 = arith.constant 0 : index
    %c0_19 = arith.constant 0 : index
    %41 = vector.load %arg5[%c0_17, %c0_18, %c0_19] : memref<1x1x256xf32, #tpu.memory_space<vmem>>, vector<1x1x256xf32>
    %42 = vector.shape_cast %36 : vector<1x256xf32> to vector<1x1x256xf32>
    %43 = arith.addf %41, %42 : vector<1x1x256xf32>
    %c0_20 = arith.constant 0 : index
    %c0_21 = arith.constant 0 : index
    %c0_22 = arith.constant 0 : index
    %44 = vector.load %arg5[%c0_20, %c0_21, %c0_22] : memref<1x1x256xf32, #tpu.memory_space<vmem>>, vector<1x1x256xf32>
    tpu.vector_store %arg5[%c0_20, %c0_21, %c0_22], %43 {strides = array<i32>} : memref<1x1x256xf32, #tpu.memory_space<vmem>>, vector<1x1x256xf32>,
    return
  }
  func.func @transform_0(%arg0: i32, %arg1: i32) -> (i32, i32, i32) {
    %c0_i32 = arith.constant 0 : i32
    %c0_i32_0 = arith.constant 0 : i32
    return %arg0, %c0_i32, %arg1 : i32, i32, i32
  }
  func.func @transform_1(%arg0: i32, %arg1: i32) -> (i32, i32, i32) {
    %c0_i32 = arith.constant 0 : i32
    %c0_i32_0 = arith.constant 0 : i32
    return %arg0, %c0_i32, %arg1 : i32, i32, i32
  }
  func.func @transform_2(%arg0: i32, %arg1: i32) -> (i32, i32, i32) {
    %c0_i32 = arith.constant 0 : i32
    %c0_i32_0 = arith.constant 0 : i32
    %c0_i32_1 = arith.constant 0 : i32
    return %arg0, %c0_i32, %c0_i32_0 : i32, i32, i32
  }
  func.func @transform_3(%arg0: i32, %arg1: i32) -> (i32, i32, i32) {
    %c0_i32 = arith.constant 0 : i32
    %c0_i32_0 = arith.constant 0 : i32
    %c0_i32_1 = arith.constant 0 : i32
    return %arg0, %c0_i32, %c0_i32_0 : i32, i32, i32
  }
}

</mosaic_0001>

<bundles_post_ra>
// kernel: tpu_custom_call.1
= control target key start
LH: loop header
LB: loop body
LE: loop exit
PB: predicated region body
PF: predicated region fallthrough
CT: control target
= control target key end

     0   :  { %9 = vsyncpa [#allocation3], 0  ;;  %s1100_s0 = inlined_call_operand.hbm [shape: f32[2,4,256], index: 0, kind: input, shape index: {}]   ;;  %s1101_s1 = inlined_call_operand.hbm [shape: s32[2,1,256], index: 1, kind: input, shape index: {}]   ;;  %s1102_s2 = inlined_call_operand.hbm [shape: f32[2,1,256], index: 2, kind: output, shape index: {0}]   ;;  %s1103_s3 = inlined_call_operand.hbm [shape: f32[2,1,256], index: 3, kind: output, shape index: {1}]  }
   0x1   :  { %11 = vsyncpa [#allocation3 + $0x1], 0 }
   0x2   :  { %12 = vsyncpa [#allocation6], 0 }
   0x3   :  { %14 = vsyncpa [#allocation6 + $0x1], 0 }
   0x4   :  { %15 = vsyncpa [#allocation4], 0 }
   0x5   :  { %17 = vsyncpa [#allocation4 + $0x1], 0 }
   0x6   :  { %18 = vsyncpa [#allocation9], 0 }
   0x7   :  { %20 = vsyncpa [#allocation9 + $0x1], 0  ;;  %s880_s12 = smov 0   ;;  %s882_s13 = smov 0  }
   0x8   :  { %s884_s14 = smov 0   ;;  %s886_s15 = smov 0  }
   0x9   :  { %s888_s16 = smov 0   ;;  %s890_s17 = smov 0  }
   0xa LB: > { %s575_s18 = sadd.s32 4294967295, %s856_s17   ;;  %s576_s19 = sadd.s32 4294967294, %s856_s17   ;;  %s856_s17 = sphi %s890_s17, %s26_s17   ;;  %s852_s16 = sphi %s888_s16, %s1119_s16   ;;  %s848_s15 = sphi %s886_s15, %s1118_s15   ;;  %s844_s14 = sphi %s884_s14, %s1117_s14   ;;  %s840_s13 = sphi %s882_s13, %s1116_s13   ;;  %s836_s12 = sphi %s880_s12, %s1115_s12  }
   0xb   : > { %s38_s20 = sadd.s32 1, %s852_s16  ;;  %s47_s21 = sadd.s32 1, %s844_s14 }
   0xc   : > { %p40_p0 = scmp.ge.s32.totalorder %s38_s20, 2  ;;  %p54_p1 = scmp.ne.s32.totalorder %s844_s14, %s840_s13 }
   0xd   : > { %p55_p2 = scmp.eq.s32.totalorder %s856_s17, 0  ;;  %p60_p3 = scmp.ne.s32.totalorder %s840_s13, %s836_s12 }
   0xe   : > { %s1121_s20 = smov (%p40_p0, %s38_s20), 0  ;;  %p61_p5 = scmp.eq.s32.totalorder %s575_s18, 0 }
   0xf   : > { %p921_p4 = por %p55_p2, %p54_p1  ;;  %s42_s23 = ssub.s32 %s852_s16, %s1121_s20 }
  0x10   : > { %p112_p6 = scmp.eq.s32.totalorder %s575_s18, 1  ;;  %p45_p7 = scmp.eq.s32.totalorder %s42_s23, 0 }
  0x11   : > { %p927_p8 = por %p61_p5, %p60_p3  ;;  %p118_p10 = scmp.eq.s32.totalorder %s576_s19, 1 }
  0x12   : > { %p931_p9 = por %p112_p6, %p54_p1  ;;  %p578_p12 = scmp.ge.s32.totalorder %s856_s17, 2 }
  0x13   : > { %s936_s26 = scalar_select %p45_p7, %s844_s14, %s47_s21  }
  0x14   : > { %p938_p11 = por %p118_p10, %p60_p3  ;;  %p620_p13 = scmp.lt.s32.totalorder %s856_s17, 2 }
  0x15   : > { %s164_s28 = sand.u32 1, %s844_s14   ;;  %s597_s30 = sshll.u32 %s852_s16, 3 }
  0x16   : > { %s579_s29 = sshll.u32 %s164_s28, 3  ;;  %s175_s6 = scalar_lea.hbm %s1100_s0, %s597_s30 }
  0x17   : > { %s168_s7 = scalar_lea.vmem [#allocation2], %s579_s29  ;;  %s177_s9 = sshll.u32 %s175_s6, 4  ;;  %s178_s9 = int_to_ptr.hbm [resolvable:$true] %s177_s9 }
  0x18   : > { %s179_s8 = sshll.u32 %s168_s7, 4  ;;  %p951_p0 = pnand %p620_p13, %p921_p4  ;;  %s180_s8 = int_to_ptr.vmem [resolvable:$true] %s179_s8 }
  0x19   : > { %p584_p1 = scmp.ge.s32.totalorder %s856_s17, 1  ;;  %p205_p2 = scmp.lt.s32.totalorder %s856_s17, 3 }
  0x1a   : > { %s165_s11 = scalar_lea.sflag [#allocation3], %s164_s28  ;;  %s582_s18 = sshll.u32 %s164_s28, 1 }
  0x1b   : > { %609 = dma.hbm_to_vmem [thread:$0]  (!%p951_p0), %s178_s9, 128, %s180_s8, %s165_s11  }
  0x1c   : > { %p206_p3 = pnand %p584_p1, %p205_p2  ;;  %s583_s19 = sshll.u32 %s852_s16, 1 }
  0x1d   : > { %s196_s29 = scalar_lea.hbm %s1101_s1, %s583_s19  ;;  %s190_s30 = scalar_lea.vmem [#allocation5], %s582_s18 }
  0x1e   : > { %s200_s22 = sshll.u32 %s190_s30, 4  ;;  %s198_s4 = sshll.u32 %s196_s29, 4  ;;  %s201_s22 = int_to_ptr.vmem [resolvable:$true] %s200_s22  ;;  %s199_s4 = int_to_ptr.hbm [resolvable:$true] %s198_s4 }
  0x1f   : > { %s187_s5 = scalar_lea.sflag [#allocation6], %s164_s28  ;;  %209 = sbr.rel (%p206_p3) target bundleno = 120 (0x78), region = 28 }
  0x20   : > { %612 = dma.hbm_to_vmem [thread:$0]  (!%p951_p0), %s199_s4, 32, %s201_s22, %s187_s5  }
  0x21   : > { %s966_s6 = sand.u32 (!%p206_p3), 1, %s840_s13  }
  0x22   : > { %s585_s7 = sshll.u32 (!%p206_p3), %s966_s6, 3  ;;  %s212_s8 = scalar_lea.sflag (!%p206_p3), [#allocation3], %s966_s6 }
  0x23   : > { %s215_s9 = scalar_lea.vmem (!%p206_p3), [#allocation2], %s585_s7 }
  0x24   : > { %819 = dma.done.wait (%p927_p8), %s212_s8, 128  }
  0x25   : > { %821 = vsyncadd (%p927_p8), %s212_s8, 4294967168  ;;  %s975_s28 = sshll.u32 %s966_s6, 1  ;;  %s222_s10 = scalar_lea.sflag [#allocation6], %s966_s6 }
  0x26   : > { %s225_s11 = scalar_lea.vmem [#allocation5], %s975_s28 }
  0x27   : > { %823 = dma.done.wait (%p927_p8), %s222_s10, 32  }
  0x28   : > { %825 = vsyncadd (%p927_p8), %s222_s10, 4294967264  ;;  %v271_v0 = vld [vmem:[%s215_s9] sm:$0xff]  ;;  %vm279_vm0 = vcmask 1043456   ;;  %v265_v15 = vlaneseq  ;;  %s995_s24 = scalar_lea.vmem [#allocation7], %s975_s28  ;;  %v858_v20 = vmov 0.0   ;;  %s1001_s18 = scalar_lea.vmem [#allocation8], %s975_s28 }
  0x29   : > { %274 = vst [vmem:[#allocation1] ss:$2 sm:$0xff] %v271_v0  ;;  %v272_v24 = vld [vmem:[%s225_s11] sm:$0x3]  ;;  %s593_s19 = sshll.u32 %s848_s15, 1  ;;  %v859_v26 = vmov 0  }
  0x2a   : > { %vm987_vm1 = vcmp.lt.s32.totalorder %v265_v15, 256  ;;  %vm364_vm2 = vcmp.ne.s32.totalorder %v272_v24, 4294967196  ;;  %s431_s29 = scalar_lea.hbm %s1103_s3, %s593_s19  ;;  %vm384_vm5 = vcmask 1040384   ;;  %s433_s30 = sshll.u32 %s1001_s18, 4  ;;  %v329_v42 = vshrl.u32 %v265_v15, 7  ;;  %s434_s30 = int_to_ptr.vmem [resolvable:$true] %s433_s30 }
  0x2b   : > { %269 = vst.msk [vmem:[%s995_s24] sm:$0x3] %vm987_vm1, %v858_v20  ;;  %v365_v27 = vsel %vm364_vm2, 1, %v859_v26  ;;  %s435_s22 = sshll.u32 %s431_s29, 4  ;;  %v330_v45 = vperm.slane %v272_v24, 0  ;;  %v331_v46 = vperm.slane %v272_v24, 1  ;;  %s436_s22 = int_to_ptr.hbm [resolvable:$true] %s435_s22 }
  0x2c   : > { %270 = vst.msk [vmem:[%s1001_s18] sm:$0x3] %vm987_vm1, %v858_v20  ;;  %v366_v28 = vperm.slane %v365_v27, 0  ;;  %v367_v29 = vperm.slane %v365_v27, 1  ;;  %s407_s4 = scalar_lea.sflag [#allocation9], %s966_s6  ;;  %s752_s5 = sshra.s32 %s436_s22, 4  ;;  %s753_s5 = int_to_ptr.hbm [resolvable:$true] %s752_s5 }
  0x2d   : > { %s754_s7 = scalar_lea.hbm %s753_s5, 2  ;;  %s758_s28 = scalar_lea.hbm %s1103_s3, 4 }
  0x2e   : > { %vm1016_vm3 = vcmp.ne.s32.totalorder %v366_v28, 0  ;;  %vm1020_vm4 = vcmp.ne.s32.totalorder %v367_v29, 0  ;;  %p755_p4 = scmp.ne.s32.totalorder %s753_s5, %s754_s7  ;;  %p759_p7 = scmp.lt.s32.totalorder %s753_s5, %s1103_s3 }
  0x2f   : > { %v589_v32 = vsel %vm1016_vm3, 1.0, %v858_v20  ;;  %v590_v33 = vsel %vm1020_vm4, 1.0, %v858_v20  ;;  %p760_p8 = scmp.lt.s32.totalorder %s758_s28, %s754_s7 }
  0x30   : > { %v275_v1 = vld.sshfl [vmem:[#allocation1] sm:$0xff pattern:$0x75316420]  ;;  %v276_v2 = vld.sshfl [vmem:[#allocation1 + $0x8] sm:$0xff pattern:$0x75316420]  ;;  %p756_p5 = pnand %p755_p4, %p931_p9 }
  0x31   : > { %v280_v3 = vsel %vm279_vm0, %v275_v1, -inf  ;;  %v287_v4 = vsel %vm279_vm0, %v276_v2, -inf  ;;  %v396_v34 = vrot.slane %v590_v33, 7  ;;  %p761_p10 = por %p760_p8, %p759_p7 }
  0x32   : > { %v281_v5 = vrot.slane %v280_v3, 4  ;;  %v288_v6 = vrot.slane %v287_v4, 4  ;;  %p757_p6 = pneg %p756_p5 }
  0x33   : > { %v393_v35 = vld [vmem:[%s1001_s18] sm:$0x3]  ;;  %v397_v36 = vsel %vm384_vm5, %v589_v32, %v396_v34 }
  0x34   : > { %v282_v7 = vmax.f32 %v280_v3, %v281_v5  ;;  %v289_v8 = vmax.f32 %v287_v4, %v288_v6  ;;  %v399_v39 = vadd.f32 %v397_v36, %v393_v35  ;;  %p762_p13 = pnand %p761_p10, %p757_p6 }
  0x36   : > { %v283_v9 = vrot.slane %v282_v7, 2  ;;  %v290_v10 = vrot.slane %v289_v8, 2  ;;  %400 = vst.msk [vmem:[%s1001_s18] sm:$0x3] %vm987_vm1, %v399_v39 }
  0x38   : > { %v284_v11 = vmax.f32 %v282_v7, %v283_v9  ;;  %v291_v12 = vmax.f32 %v289_v8, %v290_v10 }
  0x3a   : > { %v285_v13 = vrot.slane %v284_v11, 1  ;;  %v292_v14 = vrot.slane %v291_v12, 1 }
  0x3c   : > { %v985_v16 = vmax.f32 %v291_v12, %v292_v14  ;;  %v991_v18 = vmax.f32 %v284_v11, %v285_v13 }
  0x3e   : > { %v296_v19 = vrot.slane %v985_v16, 4 }
  0x40   : > { %v297_v21 = vsel %vm279_vm0, %v991_v18, %v296_v19 }
  0x41   : > { %v299_v22 = vsub.f32 %v271_v0, %v297_v21 }
  0x43   : > { %v300_v23 = vmul.f32 1.442695, %v299_v22 }
  0x45   : > { %672 = vpow2.f32 %v300_v23 }
  0x4b   : > { %v673_v25 = vpop.eup %672 }
  0x4c   : > { %303 = vst [vmem:[#allocation1] ss:$2 sm:$0xff] %v673_v25 }
  0x53   : > { %v304_v37 = vld.sshfl [vmem:[#allocation1] sm:$0xff pattern:$0x75316420]  ;;  %v305_v38 = vld.sshfl [vmem:[#allocation1 + $0x8] sm:$0xff pattern:$0x75316420] }
  0x54   : > { %v308_v40 = vsel %vm279_vm0, %v304_v37, 0.0  ;;  %v315_v41 = vsel %vm279_vm0, %v305_v38, 0.0  ;;  %334 = vst [vmem:[#allocation1] ss:$2 sm:$0xff] %v271_v0 }
  0x55   : > { %v309_v43 = vrot.slane %v308_v40, 4  ;;  %v316_v44 = vrot.slane %v315_v41, 4 }
  0x56   : > { %765 = shalt.err (!%p762_p13)
}
  0x57   : > { %603 = dma.vmem_to_hbm [thread:$0]  (%p931_p9), %s434_s30, 32, %s436_s22, %s407_s4   ;;  %v310_v47 = vadd.f32 %v309_v43, %v308_v40  ;;  %v317_v48 = vadd.f32 %v316_v44, %v315_v41  ;;  %vm332_vm6 = vcmp.eq.s32.totalorder %v329_v42, %v330_v45  ;;  %vm333_vm7 = vcmp.eq.s32.totalorder %v329_v42, %v331_v46  ;;  %v380_v23 = vld [vmem:[%s995_s24] sm:$0x3] }
  0x58   : > { %s417_s23 = scalar_lea.hbm %s1102_s2, %s593_s19  ;;  %s419_s29 = sshll.u32 %s995_s24, 4  ;;  %s420_s29 = int_to_ptr.vmem [resolvable:$true] %s419_s29 }
  0x59   : > { %v311_v49 = vrot.slane %v310_v47, 2  ;;  %v318_v50 = vrot.slane %v317_v48, 2  ;;  %s421_s30 = sshll.u32 %s417_s23, 4  ;;  %s402_s15 = scalar_lea.sflag [#allocation4], %s966_s6  ;;  %s422_s30 = int_to_ptr.hbm [resolvable:$true] %s421_s30 }
  0x5a   : > { %s780_s19 = sshra.s32 %s422_s30, 4  ;;  %s786_s7 = scalar_lea.hbm %s1102_s2, 4  ;;  %s781_s19 = int_to_ptr.hbm [resolvable:$true] %s780_s19 }
  0x5b   : > { %v312_v51 = vadd.f32 %v311_v49, %v310_v47  ;;  %v319_v52 = vadd.f32 %v318_v50, %v317_v48  ;;  %v335_v53 = vld.sshfl [vmem:[#allocation1] sm:$0xff pattern:$0x75316420]  ;;  %v336_v54 = vld.sshfl [vmem:[#allocation1 + $0x8] sm:$0xff pattern:$0x75316420]  ;;  %p787_p3 = scmp.lt.s32.totalorder %s781_s19, %s1102_s2 }
  0x5c   : > { %v339_v55 = vsel %vm332_vm6, %v335_v53, 0.0  ;;  %v340_v56 = vsel %vm333_vm7, %v336_v54, 0.0  ;;  %s782_s22 = scalar_lea.hbm %s781_s19, 2 }
  0x5d   : > { %v313_v57 = vrot.slane %v312_v51, 1  ;;  %v320_v58 = vrot.slane %v319_v52, 1  ;;  %v341_v59 = vsel %vm279_vm0, %v339_v55, 0.0  ;;  %v348_v60 = vsel %vm279_vm0, %v340_v56, 0.0  ;;  %p783_p0 = scmp.ne.s32.totalorder %s781_s19, %s782_s22  ;;  %p788_p4 = scmp.lt.s32.totalorder %s786_s7, %s782_s22 }
  0x5e   : > { %v342_v61 = vrot.slane %v341_v59, 4  ;;  %v349_v62 = vrot.slane %v348_v60, 4 }
  0x5f   : > { %v314_v63 = vadd.f32 %v313_v57, %v312_v51  ;;  %v321_v0 = vadd.f32 %v320_v58, %v319_v52  ;;  %p784_p1 = pnand %p783_p0, %p931_p9  ;;  %p789_p5 = por %p788_p4, %p787_p3 }
  0x60   : > { %v343_v1 = vadd.f32 %v342_v61, %v341_v59  ;;  %v350_v2 = vadd.f32 %v349_v62, %v348_v60 }
  0x61   : > { %674 = vlog2.f32 %v314_v63  ;;  %p785_p2 = pneg %p784_p1 }
  0x62   : > { %676 = vlog2.f32 %v321_v0  ;;  %v344_v3 = vrot.slane %v343_v1, 2  ;;  %v351_v4 = vrot.slane %v350_v2, 2 }
  0x63   : > { %p790_p6 = pnand %p789_p5, %p785_p2 }
  0x64   : > { %v345_v5 = vadd.f32 %v344_v3, %v343_v1  ;;  %v352_v6 = vadd.f32 %v351_v4, %v350_v2 }
  0x66   : > { %v346_v8 = vrot.slane %v345_v5, 1  ;;  %v353_v9 = vrot.slane %v352_v6, 1 }
  0x67   : > { %v675_v7 = vpop.eup %674 }
  0x68   : > { %v677_v10 = vpop.eup %676  ;;  %v323_v11 = vmul.f32 0.6931472, %v675_v7  ;;  %v347_v15 = vadd.f32 %v346_v8, %v345_v5  ;;  %v354_v19 = vadd.f32 %v353_v9, %v352_v6 }
  0x69   : > { %v325_v12 = vmul.f32 0.6931472, %v677_v10 }
  0x6a   : > { %v326_v13 = vadd.f32 %v323_v11, %v991_v18 }
  0x6b   : > { %v327_v14 = vadd.f32 %v325_v12, %v985_v16 }
  0x6c   : > { %v372_v20 = vsub.f32 %v326_v13, %v347_v15 }
  0x6d   : > { %v373_v21 = vsub.f32 %v327_v14, %v354_v19 }
  0x6e   : > { %v374_v16 = vsel %vm1016_vm3, %v372_v20, 0.0 }
  0x6f   : > { %v375_v22 = vsel %vm1020_vm4, %v373_v21, 0.0 }
  0x70   : > { %v383_v24 = vrot.slane %v375_v22, 7 }
  0x72   : > { %v385_v18 = vsel %vm384_vm5, %v374_v16, %v383_v24 }
  0x73   : > { %v387_v25 = vadd.f32 %v385_v18, %v380_v23 }
  0x75   : > { %392 = vst.msk [vmem:[%s995_s24] sm:$0x3] %vm987_vm1, %v387_v25 }
  0x76   : > { %793 = shalt.err (!%p790_p6)
}
  0x77   : > { %602 = dma.vmem_to_hbm [thread:$0]  (%p931_p9), %s420_s29, 32, %s422_s30, %s402_s15  }
  0x78 PF: > { %s447_s6 = sand.u32 1, %s836_s12   ;;  %p614_p7 = pnand %p578_p12, %p938_p11 }
  0x79   : > { %s448_s24 = scalar_lea.sflag [#allocation4], %s447_s6 }
  0x7a   : > { %p615_p8 = pneg %p614_p7 }
  0x7c   : > { %827 = dma.done.wait (%p615_p8), %s448_s24, 32  }
  0x7d   : > { %829 = vsyncadd (%p615_p8), %s448_s24, 4294967264  ;;  %s458_s28 = scalar_lea.sflag [#allocation9], %s447_s6 }
  0x7e   : > { %831 = dma.done.wait (%p615_p8), %s458_s28, 32  }
  0x7f   : > { %833 = vsyncadd (%p615_p8), %s458_s28, 4294967264  ;;  %s26_s17 = sadd.s32 1, %s856_s17   ;;  %s1115_s12 = smov %s840_s13 }
  0x80   : > { %p23_p10 = scmp.ge.s32.totalorder %s26_s17, 4   ;;  %s1116_s13 = smov %s844_s14 }
  0x81   : > { %s1117_s14 = smov %s936_s26  ;;  %s1118_s15 = smov %s852_s16 }
  0x82   : > { %s1119_s16 = smov %s1121_s20  ;;  %25 = sbr.rel (!%p23_p10) target bundleno = 10 (0xa), region = 107 }
  0x87   :  { %464 = vsyncpa [#allocation3], 1 }
  0x88   :  { %466 = vsyncpa [#allocation3 + $0x1], 1 }
  0x89   :  { %467 = vsyncpa [#allocation6], 1 }
  0x8a   :  { %469 = vsyncpa [#allocation6 + $0x1], 1 }
  0x8b   :  { %470 = vsyncpa [#allocation4], 1 }
  0x8c   :  { %472 = vsyncpa [#allocation4 + $0x1], 1 }
  0x8d   :  { %473 = vsyncpa [#allocation9], 1 }
  0x8e   :  { %475 = vsyncpa [#allocation9 + $0x1], 1 }

</bundles_post_ra>
